<compile_context>
chip_gen: v6e
topology: v6e:2x2x1
jax: 0.10.0
libtpu: 0.0.40
codegen_flags: <defaults>
</compile_context>

<pallas_src>
import jax
import jax.numpy as jnp
import numpy as np
from jax import lax
from jax.experimental import pallas as pl
from jax.experimental.pallas import tpu as pltpu


def lstm_kernel(x_ref, wih_ref, whh_ref, b_ref, len_ref, c_out_ref, gx_ref):
    """Single-invocation masked LSTM.

    x_ref   : (S*Bp, E)  embedded tokens, time-major rows [t*Bp + b]
    wih_ref : (E, 4H)    input weights  (W_ih^T)
    whh_ref : (H, 4H)    hidden weights (W_hh^T)
    b_ref   : (1, 4H)    b_ih + b_hh
    len_ref : (Bp, 1)    int32 valid lengths (0 for padded batch rows)
    c_out   : (Bp, H)    final cell state
    gx_ref  : (S*Bp, 4H) VMEM scratch for the hoisted input projection
    """
    SBp, _ = x_ref.shape
    Bp, H = c_out_ref.shape
    S = SBp // Bp

    # Hoisted input projection for ALL timesteps in one big MXU matmul.
    # dropout (eval) -> identity, then tanh (matches self.tanh(self.dropout(emb))).
    gx_ref[...] = (
        jnp.dot(jnp.tanh(x_ref[...]), wih_ref[...],
                preferred_element_type=jnp.float32)
        + b_ref[...]
    )

    whh = whh_ref[...]          # (H, 4H)  loaded once, stays in VMEM/vregs
    lens = len_ref[...]         # (Bp, 1)

    def step(t, carry):
        h, c = carry
        off = pl.multiple_of(t * Bp, Bp)          # sublane-aligned slice start
        gx_t = gx_ref[pl.ds(off, Bp), :]          # (Bp, 4H)
        gates = gx_t + jnp.dot(h, whh, preferred_element_type=jnp.float32)

        # PyTorch gate order: i, f, g, o.
        # One full-width sigmoid over the whole gates tile (single EUP push),
        # tanh only on the g slice; then lane-slice the activated gates.
        sig = jax.nn.sigmoid(gates)               # (Bp, 4H)
        i_g = sig[:, 0 * H:1 * H]
        f_g = sig[:, 1 * H:2 * H]
        g_g = jnp.tanh(gates[:, 2 * H:3 * H])
        o_g = sig[:, 3 * H:4 * H]

        c_new = f_g * c + i_g * g_g
        h_new = o_g * jnp.tanh(c_new)

        # pack_padded_sequence semantics: only update state while t < length[b].
        valid = t < lens                          # (Bp, 1) bool
        return jnp.where(valid, h_new, h), jnp.where(valid, c_new, c)

    h0 = jnp.zeros((Bp, H), jnp.float32)
    c0 = jnp.zeros((Bp, H), jnp.float32)
    _, c_fin = lax.fori_loop(0, S, step, (h0, c0), unroll=True)
    c_out_ref[...] = c_fin


def lstm_final_cell(x_all, lengths_p, w_ih_t, w_hh_t, bias):
    """x_all: (S*Bp, E) f32 time-major; lengths_p: (Bp,) int32 -> c: (Bp, H) f32."""
    SBp, E = x_all.shape
    Bp = lengths_p.shape[0]
    H = w_hh_t.shape[0]
    len2d = lengths_p.reshape(Bp, 1).astype(jnp.int32)
    bias2d = bias.reshape(1, 4 * H).astype(jnp.float32)

    return pl.pallas_call(
        lstm_kernel,
        out_shape=jax.ShapeDtypeStruct((Bp, H), jnp.float32),
        grid_spec=pltpu.PrefetchScalarGridSpec(
            num_scalar_prefetch=0,
            grid=(1,),                                        # single invocation
            in_specs=[
                pl.BlockSpec((SBp, E), lambda i: (0, 0)),     # all timesteps
                pl.BlockSpec((E, 4 * H), lambda i: (0, 0)),   # W_ih^T
                pl.BlockSpec((H, 4 * H), lambda i: (0, 0)),   # W_hh^T
                pl.BlockSpec((1, 4 * H), lambda i: (0, 0)),   # bias
                pl.BlockSpec((Bp, 1), lambda i: (0, 0)),      # lengths
            ],
            out_specs=pl.BlockSpec((Bp, H), lambda i: (0, 0)),
            scratch_shapes=[
                pltpu.VMEM((SBp, 4 * H), jnp.float32),        # hoisted gx buffer
            ],
        ),
        compiler_params=pltpu.CompilerParams(
            dimension_semantics=("arbitrary",)),
    )(x_all, w_ih_t, w_hh_t, bias2d, len2d)


def net_forward(tokens, lengths, params):
    """tokens: (B, S) int32, lengths: (B,) int32 -> c: (B, H) float32."""
    B, S = tokens.shape
    Bp = max(8, ((B + 7) // 8) * 8)                # pad batch to f32 sublane multiple

    emb = params["embedding"][tokens]              # glue: gather, (B, S, E)
    x_tbe = jnp.transpose(emb, (1, 0, 2))          # time-major (S, B, E)
    x_tbe = jnp.pad(x_tbe, ((0, 0), (0, Bp - B), (0, 0)))
    E = x_tbe.shape[-1]
    x_all = x_tbe.reshape(S * Bp, E).astype(jnp.float32)

    # Padded rows get length 0 so their state never updates (stays zero).
    lengths_p = jnp.pad(lengths.astype(jnp.int32), (0, Bp - B))

    c = lstm_final_cell(x_all, lengths_p,
                        params["w_ih_t"], params["w_hh_t"], params["bias"])
    return c[:B]                                   # drop padded batch rows


def reference_forward(tokens, lengths, params):
    """Pure-JAX reference of the same masked LSTM (for correctness check)."""
    emb = params["embedding"][tokens]
    x_tbe = jnp.transpose(jnp.tanh(emb), (1, 0, 2)).astype(jnp.float32)
    H = params["w_hh_t"].shape[0]
    B = tokens.shape[0]

    def step(carry, inp):
        h, c = carry
        x, t = inp
        gates = (x @ params["w_ih_t"] + params["bias"]) + h @ params["w_hh_t"]
        i = jax.nn.sigmoid(gates[:, 0 * H:1 * H])
        f = jax.nn.sigmoid(gates[:, 1 * H:2 * H])
        g = jnp.tanh(gates[:, 2 * H:3 * H])
        o = jax.nn.sigmoid(gates[:, 3 * H:4 * H])
        c_new = f * c + i * g
        h_new = o * jnp.tanh(c_new)
        mask = (t < lengths)[:, None]
        return (jnp.where(mask, h_new, h), jnp.where(mask, c_new, c)), None

    h0 = jnp.zeros((B, H), jnp.float32)
    c0 = jnp.zeros((B, H), jnp.float32)
    (h, c), _ = lax.scan(step, (h0, c0),
                         (x_tbe, jnp.arange(x_tbe.shape[0], dtype=jnp.int32)))
    return c


if __name__ == "__main__":
    # Small deterministic setup consistent with the module's __init__ shapes.
    VOCAB, E, H = 50, 32, 32          # embedding_tokens, embedding_features, lstm_features
    B, S = 2, 8

    key = jax.random.PRNGKey(0)
    k_emb, k_ih, k_hh, k_tok = jax.random.split(key, 4)

    # init.normal_ on embedding and on each 4-chunk of W_ih / W_hh; biases zero.
    embedding = jax.random.normal(k_emb, (VOCAB, E), jnp.float32)
    w_ih = jax.random.normal(k_ih, (4 * H, E), jnp.float32)       # PyTorch layout (4H, E)
    w_hh = jax.random.normal(k_hh, (4 * H, H), jnp.float32)       # PyTorch layout (4H, H)
    bias = jnp.zeros((4 * H,), jnp.float32)                       # b_ih + b_hh = 0

    params = {
        "embedding": embedding,
        "w_ih_t": w_ih.T,      # (E, 4H)
        "w_hh_t": w_hh.T,      # (H, 4H)
        "bias": bias,
    }

    # Lengths must be descending for pack_padded_sequence (PyTorch requirement).
    lengths = jnp.array([8, 5], dtype=jnp.int32)
    tokens = jax.random.randint(k_tok, (B, S), 1, VOCAB, dtype=jnp.int32)
    # Zero out padding positions (token id 0 == padding_idx).
    pos = jnp.arange(S)[None, :]
    tokens = jnp.where(pos < lengths[:, None], tokens, 0)

    # TODO(synk): nn.Dropout(0.5) in training mode is stochastic; implemented as
    # identity (eval-mode semantics) for determinism.

    fwd = jax.jit(net_forward)
    c_kernel = jax.block_until_ready(fwd(tokens, lengths, params))
    c_ref = jax.block_until_ready(reference_forward(tokens, lengths, params))

    assert c_kernel.shape == (B, H)
    np.testing.assert_allclose(np.asarray(c_kernel), np.asarray(c_ref),
                               rtol=1e-4, atol=1e-4)
    print("KERNEL_OK")
</pallas_src>

<mosaic_0001>
module attributes {stable_mosaic.version = 11 : i64} {
  func.func @lstm_kernel(%arg0: i32, %arg1: memref<64x32xf32, #tpu.memory_space<vmem>>, %arg2: memref<32x128xf32, #tpu.memory_space<vmem>>, %arg3: memref<32x128xf32, #tpu.memory_space<vmem>>, %arg4: memref<1x128xf32, #tpu.memory_space<vmem>>, %arg5: memref<8x1xi32, #tpu.memory_space<vmem>>, %arg6: memref<8x32xf32, #tpu.memory_space<vmem>>, %arg7: memref<64x128xf32, #tpu.memory_space<vmem>>) attributes {dimension_semantics = [#tpu.dimension_semantics<arbitrary>], iteration_bounds = array<i64: 1>, scalar_prefetch = 0 : i64, scratch_operands = 1 : i64, tpu.core_type = #tpu.core_type<tc>, window_params = [{pipeline_mode = #tpu.pipeline_mode<synchronous>, transform_indices = @transform_0, window_bounds = array<i64: 64, 32>}, {pipeline_mode = #tpu.pipeline_mode<synchronous>, transform_indices = @transform_1, window_bounds = array<i64: 32, 128>}, {pipeline_mode = #tpu.pipeline_mode<synchronous>, transform_indices = @transform_2, window_bounds = array<i64: 32, 128>}, {pipeline_mode = #tpu.pipeline_mode<synchronous>, transform_indices = @transform_3, window_bounds = array<i64: 1, 128>}, {pipeline_mode = #tpu.pipeline_mode<synchronous>, transform_indices = @transform_4, window_bounds = array<i64: 8, 1>}, {pipeline_mode = #tpu.pipeline_mode<synchronous>, transform_indices = @transform_5, window_bounds = array<i64: 8, 32>}]} {
    %c0 = arith.constant 0 : index
    %c0_0 = arith.constant 0 : index
    %0 = vector.load %arg1[%c0, %c0_0] : memref<64x32xf32, #tpu.memory_space<vmem>>, vector<64x32xf32>
    %1 = math.tanh %0 : vector<64x32xf32>
    %c0_1 = arith.constant 0 : index
    %c0_2 = arith.constant 0 : index
    %2 = vector.load %arg2[%c0_1, %c0_2] : memref<32x128xf32, #tpu.memory_space<vmem>>, vector<32x128xf32>
    %cst = arith.constant dense<0.000000e+00> : vector<64x128xf32>
    %3 = tpu.matmul %1, %2, %cst {dimension_numbers = #tpu.dot_dimension_numbers<[1], [0], [0], [1], [0, 0, 1, 1], [], []>} : vector<64x32xf32>, vector<32x128xf32>, vector<64x128xf32> -> vector<64x128xf32>
    %c0_3 = arith.constant 0 : index
    %c0_4 = arith.constant 0 : index
    %4 = vector.load %arg4[%c0_3, %c0_4] : memref<1x128xf32, #tpu.memory_space<vmem>>, vector<1x128xf32>
    %5 = vector.broadcast %4 : vector<1x128xf32> to vector<64x128xf32>
    %6 = arith.addf %3, %5 : vector<64x128xf32>
    %c0_5 = arith.constant 0 : index
    %c0_6 = arith.constant 0 : index
    %7 = vector.load %arg7[%c0_5, %c0_6] : memref<64x128xf32, #tpu.memory_space<vmem>>, vector<64x128xf32>
    tpu.vector_store %arg7[%c0_5, %c0_6], %6 {strides = array<i32>} : memref<64x128xf32, #tpu.memory_space<vmem>>, vector<64x128xf32>,
    %c0_7 = arith.constant 0 : index
    %c0_8 = arith.constant 0 : index
    %8 = vector.load %arg3[%c0_7, %c0_8] : memref<32x128xf32, #tpu.memory_space<vmem>>, vector<32x128xf32>
    %c0_9 = arith.constant 0 : index
    %c0_10 = arith.constant 0 : index
    %9 = vector.load %arg5[%c0_9, %c0_10] : memref<8x1xi32, #tpu.memory_space<vmem>>, vector<8x1xi32>
    %cst_11 = arith.constant 0.000000e+00 : f32
    %10 = vector.broadcast %cst_11 : f32 to vector<8x32xf32>
    %cst_12 = arith.constant 0.000000e+00 : f32
    %11 = vector.broadcast %cst_12 : f32 to vector<8x32xf32>
    %c0_i32 = arith.constant 0 : i32
    %c8_i32 = arith.constant 8 : i32
    %12 = arith.muli %c0_i32, %c8_i32 : i32
    %13 = tpu.assume_multiple %12, 8 : i32
    %14 = arith.index_cast %13 : i32 to index
    %c0_13 = arith.constant 0 : index
    %15 = vector.load %arg7[%14, %c0_13] : memref<64x128xf32, #tpu.memory_space<vmem>>, vector<8x128xf32>
    %cst_14 = arith.constant dense<0.000000e+00> : vector<8x128xf32>
    %16 = tpu.matmul %10, %8, %cst_14 {dimension_numbers = #tpu.dot_dimension_numbers<[1], [0], [0], [1], [0, 0, 1, 1], [], []>} : vector<8x32xf32>, vector<32x128xf32>, vector<8x128xf32> -> vector<8x128xf32>
    %17 = arith.addf %15, %16 : vector<8x128xf32>
    %18 = arith.negf %17 : vector<8x128xf32>
    %19 = math.exp %18 : vector<8x128xf32>
    %cst_15 = arith.constant 1.000000e+00 : f32
    %20 = vector.broadcast %cst_15 : f32 to vector<8x128xf32>
    %21 = arith.addf %20, %19 : vector<8x128xf32>
    %22 = arith.divf %20, %21 : vector<8x128xf32>
    %23 = vector.extract_strided_slice %22 {offsets = [0, 0], sizes = [8, 32], strides = [1, 1]} : vector<8x128xf32> to vector<8x32xf32>
    %24 = vector.extract_strided_slice %22 {offsets = [0, 32], sizes = [8, 32], strides = [1, 1]} : vector<8x128xf32> to vector<8x32xf32>
    %25 = vector.extract_strided_slice %17 {offsets = [0, 64], sizes = [8, 32], strides = [1, 1]} : vector<8x128xf32> to vector<8x32xf32>
    %26 = math.tanh %25 : vector<8x32xf32>
    %27 = vector.extract_strided_slice %22 {offsets = [0, 96], sizes = [8, 32], strides = [1, 1]} : vector<8x128xf32> to vector<8x32xf32>
    %28 = arith.mulf %24, %11 : vector<8x32xf32>
    %29 = arith.mulf %23, %26 : vector<8x32xf32>
    %30 = arith.addf %28, %29 : vector<8x32xf32>
    %31 = math.tanh %30 : vector<8x32xf32>
    %32 = arith.mulf %27, %31 : vector<8x32xf32>
    %33 = vector.broadcast %c0_i32 : i32 to vector<8x1xi32>
    %34 = arith.cmpi slt, %33, %9 : vector<8x1xi32>
    %35 = vector.shape_cast %34 : vector<8x1xi1> to vector<8x1xi1>
    %36 = vector.broadcast %35 : vector<8x1xi1> to vector<8x32xi1>
    %37 = arith.select %36, %32, %10 : vector<8x32xi1>, vector<8x32xf32>
    %38 = vector.shape_cast %34 : vector<8x1xi1> to vector<8x1xi1>
    %39 = vector.broadcast %38 : vector<8x1xi1> to vector<8x32xi1>
    %40 = arith.select %39, %30, %11 : vector<8x32xi1>, vector<8x32xf32>
    %c1_i32 = arith.constant 1 : i32
    %c8_i32_16 = arith.constant 8 : i32
    %41 = arith.muli %c1_i32, %c8_i32_16 : i32
    %42 = tpu.assume_multiple %41, 8 : i32
    %43 = arith.index_cast %42 : i32 to index
    %c0_17 = arith.constant 0 : index
    %44 = vector.load %arg7[%43, %c0_17] : memref<64x128xf32, #tpu.memory_space<vmem>>, vector<8x128xf32>
    %cst_18 = arith.constant dense<0.000000e+00> : vector<8x128xf32>
    %45 = tpu.matmul %37, %8, %cst_18 {dimension_numbers = #tpu.dot_dimension_numbers<[1], [0], [0], [1], [0, 0, 1, 1], [], []>} : vector<8x32xf32>, vector<32x128xf32>, vector<8x128xf32> -> vector<8x128xf32>
    %46 = arith.addf %44, %45 : vector<8x128xf32>
    %47 = arith.negf %46 : vector<8x128xf32>
    %48 = math.exp %47 : vector<8x128xf32>
    %cst_19 = arith.constant 1.000000e+00 : f32
    %49 = vector.broadcast %cst_19 : f32 to vector<8x128xf32>
    %50 = arith.addf %49, %48 : vector<8x128xf32>
    %51 = arith.divf %49, %50 : vector<8x128xf32>
    %52 = vector.extract_strided_slice %51 {offsets = [0, 0], sizes = [8, 32], strides = [1, 1]} : vector<8x128xf32> to vector<8x32xf32>
    %53 = vector.extract_strided_slice %51 {offsets = [0, 32], sizes = [8, 32], strides = [1, 1]} : vector<8x128xf32> to vector<8x32xf32>
    %54 = vector.extract_strided_slice %46 {offsets = [0, 64], sizes = [8, 32], strides = [1, 1]} : vector<8x128xf32> to vector<8x32xf32>
    %55 = math.tanh %54 : vector<8x32xf32>
    %56 = vector.extract_strided_slice %51 {offsets = [0, 96], sizes = [8, 32], strides = [1, 1]} : vector<8x128xf32> to vector<8x32xf32>
    %57 = arith.mulf %53, %40 : vector<8x32xf32>
    %58 = arith.mulf %52, %55 : vector<8x32xf32>
    %59 = arith.addf %57, %58 : vector<8x32xf32>
    %60 = math.tanh %59 : vector<8x32xf32>
    %61 = arith.mulf %56, %60 : vector<8x32xf32>
    %62 = vector.broadcast %c1_i32 : i32 to vector<8x1xi32>
    %63 = arith.cmpi slt, %62, %9 : vector<8x1xi32>
    %64 = vector.shape_cast %63 : vector<8x1xi1> to vector<8x1xi1>
    %65 = vector.broadcast %64 : vector<8x1xi1> to vector<8x32xi1>
    %66 = arith.select %65, %61, %37 : vector<8x32xi1>, vector<8x32xf32>
    %67 = vector.shape_cast %63 : vector<8x1xi1> to vector<8x1xi1>
    %68 = vector.broadcast %67 : vector<8x1xi1> to vector<8x32xi1>
    %69 = arith.select %68, %59, %40 : vector<8x32xi1>, vector<8x32xf32>
    %c2_i32 = arith.constant 2 : i32
    %c8_i32_20 = arith.constant 8 : i32
    %70 = arith.muli %c2_i32, %c8_i32_20 : i32
    %71 = tpu.assume_multiple %70, 8 : i32
    %72 = arith.index_cast %71 : i32 to index
    %c0_21 = arith.constant 0 : index
    %73 = vector.load %arg7[%72, %c0_21] : memref<64x128xf32, #tpu.memory_space<vmem>>, vector<8x128xf32>
    %cst_22 = arith.constant dense<0.000000e+00> : vector<8x128xf32>
    %74 = tpu.matmul %66, %8, %cst_22 {dimension_numbers = #tpu.dot_dimension_numbers<[1], [0], [0], [1], [0, 0, 1, 1], [], []>} : vector<8x32xf32>, vector<32x128xf32>, vector<8x128xf32> -> vector<8x128xf32>
    %75 = arith.addf %73, %74 : vector<8x128xf32>
    %76 = arith.negf %75 : vector<8x128xf32>
    %77 = math.exp %76 : vector<8x128xf32>
    %cst_23 = arith.constant 1.000000e+00 : f32
    %78 = vector.broadcast %cst_23 : f32 to vector<8x128xf32>
    %79 = arith.addf %78, %77 : vector<8x128xf32>
    %80 = arith.divf %78, %79 : vector<8x128xf32>
    %81 = vector.extract_strided_slice %80 {offsets = [0, 0], sizes = [8, 32], strides = [1, 1]} : vector<8x128xf32> to vector<8x32xf32>
    %82 = vector.extract_strided_slice %80 {offsets = [0, 32], sizes = [8, 32], strides = [1, 1]} : vector<8x128xf32> to vector<8x32xf32>
    %83 = vector.extract_strided_slice %75 {offsets = [0, 64], sizes = [8, 32], strides = [1, 1]} : vector<8x128xf32> to vector<8x32xf32>
    %84 = math.tanh %83 : vector<8x32xf32>
    %85 = vector.extract_strided_slice %80 {offsets = [0, 96], sizes = [8, 32], strides = [1, 1]} : vector<8x128xf32> to vector<8x32xf32>
    %86 = arith.mulf %82, %69 : vector<8x32xf32>
    %87 = arith.mulf %81, %84 : vector<8x32xf32>
    %88 = arith.addf %86, %87 : vector<8x32xf32>
    %89 = math.tanh %88 : vector<8x32xf32>
    %90 = arith.mulf %85, %89 : vector<8x32xf32>
    %91 = vector.broadcast %c2_i32 : i32 to vector<8x1xi32>
    %92 = arith.cmpi slt, %91, %9 : vector<8x1xi32>
    %93 = vector.shape_cast %92 : vector<8x1xi1> to vector<8x1xi1>
    %94 = vector.broadcast %93 : vector<8x1xi1> to vector<8x32xi1>
    %95 = arith.select %94, %90, %66 : vector<8x32xi1>, vector<8x32xf32>
    %96 = vector.shape_cast %92 : vector<8x1xi1> to vector<8x1xi1>
    %97 = vector.broadcast %96 : vector<8x1xi1> to vector<8x32xi1>
    %98 = arith.select %97, %88, %69 : vector<8x32xi1>, vector<8x32xf32>
    %c3_i32 = arith.constant 3 : i32
    %c8_i32_24 = arith.constant 8 : i32
    %99 = arith.muli %c3_i32, %c8_i32_24 : i32
    %100 = tpu.assume_multiple %99, 8 : i32
    %101 = arith.index_cast %100 : i32 to index
    %c0_25 = arith.constant 0 : index
    %102 = vector.load %arg7[%101, %c0_25] : memref<64x128xf32, #tpu.memory_space<vmem>>, vector<8x128xf32>
    %cst_26 = arith.constant dense<0.000000e+00> : vector<8x128xf32>
    %103 = tpu.matmul %95, %8, %cst_26 {dimension_numbers = #tpu.dot_dimension_numbers<[1], [0], [0], [1], [0, 0, 1, 1], [], []>} : vector<8x32xf32>, vector<32x128xf32>, vector<8x128xf32> -> vector<8x128xf32>
    %104 = arith.addf %102, %103 : vector<8x128xf32>
    %105 = arith.negf %104 : vector<8x128xf32>
    %106 = math.exp %105 : vector<8x128xf32>
    %cst_27 = arith.constant 1.000000e+00 : f32
    %107 = vector.broadcast %cst_27 : f32 to vector<8x128xf32>
    %108 = arith.addf %107, %106 : vector<8x128xf32>
    %109 = arith.divf %107, %108 : vector<8x128xf32>
    %110 = vector.extract_strided_slice %109 {offsets = [0, 0], sizes = [8, 32], strides = [1, 1]} : vector<8x128xf32> to vector<8x32xf32>
    %111 = vector.extract_strided_slice %109 {offsets = [0, 32], sizes = [8, 32], strides = [1, 1]} : vector<8x128xf32> to vector<8x32xf32>
    %112 = vector.extract_strided_slice %104 {offsets = [0, 64], sizes = [8, 32], strides = [1, 1]} : vector<8x128xf32> to vector<8x32xf32>
    %113 = math.tanh %112 : vector<8x32xf32>
    %114 = vector.extract_strided_slice %109 {offsets = [0, 96], sizes = [8, 32], strides = [1, 1]} : vector<8x128xf32> to vector<8x32xf32>
    %115 = arith.mulf %111, %98 : vector<8x32xf32>
    %116 = arith.mulf %110, %113 : vector<8x32xf32>
    %117 = arith.addf %115, %116 : vector<8x32xf32>
    %118 = math.tanh %117 : vector<8x32xf32>
    %119 = arith.mulf %114, %118 : vector<8x32xf32>
    %120 = vector.broadcast %c3_i32 : i32 to vector<8x1xi32>
    %121 = arith.cmpi slt, %120, %9 : vector<8x1xi32>
    %122 = vector.shape_cast %121 : vector<8x1xi1> to vector<8x1xi1>
    %123 = vector.broadcast %122 : vector<8x1xi1> to vector<8x32xi1>
    %124 = arith.select %123, %119, %95 : vector<8x32xi1>, vector<8x32xf32>
    %125 = vector.shape_cast %121 : vector<8x1xi1> to vector<8x1xi1>
    %126 = vector.broadcast %125 : vector<8x1xi1> to vector<8x32xi1>
    %127 = arith.select %126, %117, %98 : vector<8x32xi1>, vector<8x32xf32>
    %c4_i32 = arith.constant 4 : i32
    %c8_i32_28 = arith.constant 8 : i32
    %128 = arith.muli %c4_i32, %c8_i32_28 : i32
    %129 = tpu.assume_multiple %128, 8 : i32
    %130 = arith.index_cast %129 : i32 to index
    %c0_29 = arith.constant 0 : index
    %131 = vector.load %arg7[%130, %c0_29] : memref<64x128xf32, #tpu.memory_space<vmem>>, vector<8x128xf32>
    %cst_30 = arith.constant dense<0.000000e+00> : vector<8x128xf32>
    %132 = tpu.matmul %124, %8, %cst_30 {dimension_numbers = #tpu.dot_dimension_numbers<[1], [0], [0], [1], [0, 0, 1, 1], [], []>} : vector<8x32xf32>, vector<32x128xf32>, vector<8x128xf32> -> vector<8x128xf32>
    %133 = arith.addf %131, %132 : vector<8x128xf32>
    %134 = arith.negf %133 : vector<8x128xf32>
    %135 = math.exp %134 : vector<8x128xf32>
    %cst_31 = arith.constant 1.000000e+00 : f32
    %136 = vector.broadcast %cst_31 : f32 to vector<8x128xf32>
    %137 = arith.addf %136, %135 : vector<8x128xf32>
    %138 = arith.divf %136, %137 : vector<8x128xf32>
    %139 = vector.extract_strided_slice %138 {offsets = [0, 0], sizes = [8, 32], strides = [1, 1]} : vector<8x128xf32> to vector<8x32xf32>
    %140 = vector.extract_strided_slice %138 {offsets = [0, 32], sizes = [8, 32], strides = [1, 1]} : vector<8x128xf32> to vector<8x32xf32>
    %141 = vector.extract_strided_slice %133 {offsets = [0, 64], sizes = [8, 32], strides = [1, 1]} : vector<8x128xf32> to vector<8x32xf32>
    %142 = math.tanh %141 : vector<8x32xf32>
    %143 = vector.extract_strided_slice %138 {offsets = [0, 96], sizes = [8, 32], strides = [1, 1]} : vector<8x128xf32> to vector<8x32xf32>
    %144 = arith.mulf %140, %127 : vector<8x32xf32>
    %145 = arith.mulf %139, %142 : vector<8x32xf32>
    %146 = arith.addf %144, %145 : vector<8x32xf32>
    %147 = math.tanh %146 : vector<8x32xf32>
    %148 = arith.mulf %143, %147 : vector<8x32xf32>
    %149 = vector.broadcast %c4_i32 : i32 to vector<8x1xi32>
    %150 = arith.cmpi slt, %149, %9 : vector<8x1xi32>
    %151 = vector.shape_cast %150 : vector<8x1xi1> to vector<8x1xi1>
    %152 = vector.broadcast %151 : vector<8x1xi1> to vector<8x32xi1>
    %153 = arith.select %152, %148, %124 : vector<8x32xi1>, vector<8x32xf32>
    %154 = vector.shape_cast %150 : vector<8x1xi1> to vector<8x1xi1>
    %155 = vector.broadcast %154 : vector<8x1xi1> to vector<8x32xi1>
    %156 = arith.select %155, %146, %127 : vector<8x32xi1>, vector<8x32xf32>
    %c5_i32 = arith.constant 5 : i32
    %c8_i32_32 = arith.constant 8 : i32
    %157 = arith.muli %c5_i32, %c8_i32_32 : i32
    %158 = tpu.assume_multiple %157, 8 : i32
    %159 = arith.index_cast %158 : i32 to index
    %c0_33 = arith.constant 0 : index
    %160 = vector.load %arg7[%159, %c0_33] : memref<64x128xf32, #tpu.memory_space<vmem>>, vector<8x128xf32>
    %cst_34 = arith.constant dense<0.000000e+00> : vector<8x128xf32>
    %161 = tpu.matmul %153, %8, %cst_34 {dimension_numbers = #tpu.dot_dimension_numbers<[1], [0], [0], [1], [0, 0, 1, 1], [], []>} : vector<8x32xf32>, vector<32x128xf32>, vector<8x128xf32> -> vector<8x128xf32>
    %162 = arith.addf %160, %161 : vector<8x128xf32>
    %163 = arith.negf %162 : vector<8x128xf32>
    %164 = math.exp %163 : vector<8x128xf32>
    %cst_35 = arith.constant 1.000000e+00 : f32
    %165 = vector.broadcast %cst_35 : f32 to vector<8x128xf32>
    %166 = arith.addf %165, %164 : vector<8x128xf32>
    %167 = arith.divf %165, %166 : vector<8x128xf32>
    %168 = vector.extract_strided_slice %167 {offsets = [0, 0], sizes = [8, 32], strides = [1, 1]} : vector<8x128xf32> to vector<8x32xf32>
    %169 = vector.extract_strided_slice %167 {offsets = [0, 32], sizes = [8, 32], strides = [1, 1]} : vector<8x128xf32> to vector<8x32xf32>
    %170 = vector.extract_strided_slice %162 {offsets = [0, 64], sizes = [8, 32], strides = [1, 1]} : vector<8x128xf32> to vector<8x32xf32>
    %171 = math.tanh %170 : vector<8x32xf32>
    %172 = vector.extract_strided_slice %167 {offsets = [0, 96], sizes = [8, 32], strides = [1, 1]} : vector<8x128xf32> to vector<8x32xf32>
    %173 = arith.mulf %169, %156 : vector<8x32xf32>
    %174 = arith.mulf %168, %171 : vector<8x32xf32>
    %175 = arith.addf %173, %174 : vector<8x32xf32>
    %176 = math.tanh %175 : vector<8x32xf32>
    %177 = arith.mulf %172, %176 : vector<8x32xf32>
    %178 = vector.broadcast %c5_i32 : i32 to vector<8x1xi32>
    %179 = arith.cmpi slt, %178, %9 : vector<8x1xi32>
    %180 = vector.shape_cast %179 : vector<8x1xi1> to vector<8x1xi1>
    %181 = vector.broadcast %180 : vector<8x1xi1> to vector<8x32xi1>
    %182 = arith.select %181, %177, %153 : vector<8x32xi1>, vector<8x32xf32>
    %183 = vector.shape_cast %179 : vector<8x1xi1> to vector<8x1xi1>
    %184 = vector.broadcast %183 : vector<8x1xi1> to vector<8x32xi1>
    %185 = arith.select %184, %175, %156 : vector<8x32xi1>, vector<8x32xf32>
    %c6_i32 = arith.constant 6 : i32
    %c8_i32_36 = arith.constant 8 : i32
    %186 = arith.muli %c6_i32, %c8_i32_36 : i32
    %187 = tpu.assume_multiple %186, 8 : i32
    %188 = arith.index_cast %187 : i32 to index
    %c0_37 = arith.constant 0 : index
    %189 = vector.load %arg7[%188, %c0_37] : memref<64x128xf32, #tpu.memory_space<vmem>>, vector<8x128xf32>
    %cst_38 = arith.constant dense<0.000000e+00> : vector<8x128xf32>
    %190 = tpu.matmul %182, %8, %cst_38 {dimension_numbers = #tpu.dot_dimension_numbers<[1], [0], [0], [1], [0, 0, 1, 1], [], []>} : vector<8x32xf32>, vector<32x128xf32>, vector<8x128xf32> -> vector<8x128xf32>
    %191 = arith.addf %189, %190 : vector<8x128xf32>
    %192 = arith.negf %191 : vector<8x128xf32>
    %193 = math.exp %192 : vector<8x128xf32>
    %cst_39 = arith.constant 1.000000e+00 : f32
    %194 = vector.broadcast %cst_39 : f32 to vector<8x128xf32>
    %195 = arith.addf %194, %193 : vector<8x128xf32>
    %196 = arith.divf %194, %195 : vector<8x128xf32>
    %197 = vector.extract_strided_slice %196 {offsets = [0, 0], sizes = [8, 32], strides = [1, 1]} : vector<8x128xf32> to vector<8x32xf32>
    %198 = vector.extract_strided_slice %196 {offsets = [0, 32], sizes = [8, 32], strides = [1, 1]} : vector<8x128xf32> to vector<8x32xf32>
    %199 = vector.extract_strided_slice %191 {offsets = [0, 64], sizes = [8, 32], strides = [1, 1]} : vector<8x128xf32> to vector<8x32xf32>
    %200 = math.tanh %199 : vector<8x32xf32>
    %201 = vector.extract_strided_slice %196 {offsets = [0, 96], sizes = [8, 32], strides = [1, 1]} : vector<8x128xf32> to vector<8x32xf32>
    %202 = arith.mulf %198, %185 : vector<8x32xf32>
    %203 = arith.mulf %197, %200 : vector<8x32xf32>
    %204 = arith.addf %202, %203 : vector<8x32xf32>
    %205 = math.tanh %204 : vector<8x32xf32>
    %206 = arith.mulf %201, %205 : vector<8x32xf32>
    %207 = vector.broadcast %c6_i32 : i32 to vector<8x1xi32>
    %208 = arith.cmpi slt, %207, %9 : vector<8x1xi32>
    %209 = vector.shape_cast %208 : vector<8x1xi1> to vector<8x1xi1>
    %210 = vector.broadcast %209 : vector<8x1xi1> to vector<8x32xi1>
    %211 = arith.select %210, %206, %182 : vector<8x32xi1>, vector<8x32xf32>
    %212 = vector.shape_cast %208 : vector<8x1xi1> to vector<8x1xi1>
    %213 = vector.broadcast %212 : vector<8x1xi1> to vector<8x32xi1>
    %214 = arith.select %213, %204, %185 : vector<8x32xi1>, vector<8x32xf32>
    %c7_i32 = arith.constant 7 : i32
    %c8_i32_40 = arith.constant 8 : i32
    %215 = arith.muli %c7_i32, %c8_i32_40 : i32
    %216 = tpu.assume_multiple %215, 8 : i32
    %217 = arith.index_cast %216 : i32 to index
    %c0_41 = arith.constant 0 : index
    %218 = vector.load %arg7[%217, %c0_41] : memref<64x128xf32, #tpu.memory_space<vmem>>, vector<8x128xf32>
    %cst_42 = arith.constant dense<0.000000e+00> : vector<8x128xf32>
    %219 = tpu.matmul %211, %8, %cst_42 {dimension_numbers = #tpu.dot_dimension_numbers<[1], [0], [0], [1], [0, 0, 1, 1], [], []>} : vector<8x32xf32>, vector<32x128xf32>, vector<8x128xf32> -> vector<8x128xf32>
    %220 = arith.addf %218, %219 : vector<8x128xf32>
    %221 = arith.negf %220 : vector<8x128xf32>
    %222 = math.exp %221 : vector<8x128xf32>
    %cst_43 = arith.constant 1.000000e+00 : f32
    %223 = vector.broadcast %cst_43 : f32 to vector<8x128xf32>
    %224 = arith.addf %223, %222 : vector<8x128xf32>
    %225 = arith.divf %223, %224 : vector<8x128xf32>
    %226 = vector.extract_strided_slice %225 {offsets = [0, 0], sizes = [8, 32], strides = [1, 1]} : vector<8x128xf32> to vector<8x32xf32>
    %227 = vector.extract_strided_slice %225 {offsets = [0, 32], sizes = [8, 32], strides = [1, 1]} : vector<8x128xf32> to vector<8x32xf32>
    %228 = vector.extract_strided_slice %220 {offsets = [0, 64], sizes = [8, 32], strides = [1, 1]} : vector<8x128xf32> to vector<8x32xf32>
    %229 = math.tanh %228 : vector<8x32xf32>
    %230 = vector.extract_strided_slice %225 {offsets = [0, 96], sizes = [8, 32], strides = [1, 1]} : vector<8x128xf32> to vector<8x32xf32>
    %231 = arith.mulf %227, %214 : vector<8x32xf32>
    %232 = arith.mulf %226, %229 : vector<8x32xf32>
    %233 = arith.addf %231, %232 : vector<8x32xf32>
    %234 = math.tanh %233 : vector<8x32xf32>
    %235 = arith.mulf %230, %234 : vector<8x32xf32>
    %236 = vector.broadcast %c7_i32 : i32 to vector<8x1xi32>
    %237 = arith.cmpi slt, %236, %9 : vector<8x1xi32>
    %238 = vector.shape_cast %237 : vector<8x1xi1> to vector<8x1xi1>
    %239 = vector.broadcast %238 : vector<8x1xi1> to vector<8x32xi1>
    %240 = arith.select %239, %235, %211 : vector<8x32xi1>, vector<8x32xf32>
    %241 = vector.shape_cast %237 : vector<8x1xi1> to vector<8x1xi1>
    %242 = vector.broadcast %241 : vector<8x1xi1> to vector<8x32xi1>
    %243 = arith.select %242, %233, %214 : vector<8x32xi1>, vector<8x32xf32>
    %c8_i32_44 = arith.constant 8 : i32
    %c0_45 = arith.constant 0 : index
    %c0_46 = arith.constant 0 : index
    %244 = vector.load %arg6[%c0_45, %c0_46] : memref<8x32xf32, #tpu.memory_space<vmem>>, vector<8x32xf32>
    tpu.vector_store %arg6[%c0_45, %c0_46], %243 {strides = array<i32>} : memref<8x32xf32, #tpu.memory_space<vmem>>, vector<8x32xf32>,
    return
  }
  func.func @transform_0(%arg0: i32) -> (i32, i32) {
    %c0_i32 = arith.constant 0 : i32
    %c0_i32_0 = arith.constant 0 : i32
    %c0_i32_1 = arith.constant 0 : i32
    return %c0_i32, %c0_i32_0 : i32, i32
  }
  func.func @transform_1(%arg0: i32) -> (i32, i32) {
    %c0_i32 = arith.constant 0 : i32
    %c0_i32_0 = arith.constant 0 : i32
    %c0_i32_1 = arith.constant 0 : i32
    return %c0_i32, %c0_i32_0 : i32, i32
  }
  func.func @transform_2(%arg0: i32) -> (i32, i32) {
    %c0_i32 = arith.constant 0 : i32
    %c0_i32_0 = arith.constant 0 : i32
    %c0_i32_1 = arith.constant 0 : i32
    return %c0_i32, %c0_i32_0 : i32, i32
  }
  func.func @transform_3(%arg0: i32) -> (i32, i32) {
    %c0_i32 = arith.constant 0 : i32
    %c0_i32_0 = arith.constant 0 : i32
    %c0_i32_1 = arith.constant 0 : i32
    return %c0_i32, %c0_i32_0 : i32, i32
  }
  func.func @transform_4(%arg0: i32) -> (i32, i32) {
    %c0_i32 = arith.constant 0 : i32
    %c0_i32_0 = arith.constant 0 : i32
    %c0_i32_1 = arith.constant 0 : i32
    return %c0_i32, %c0_i32_0 : i32, i32
  }
  func.func @transform_5(%arg0: i32) -> (i32, i32) {
    %c0_i32 = arith.constant 0 : i32
    %c0_i32_0 = arith.constant 0 : i32
    %c0_i32_1 = arith.constant 0 : i32
    return %c0_i32, %c0_i32_0 : i32, i32
  }
}

</mosaic_0001>

<bundles_post_ra>
// kernel: net_forward.1
= control target key start
LH: loop header
LB: loop body
LE: loop exit
PB: predicated region body
PF: predicated region fallthrough
CT: control target
= control target key end

     0   :  { %v1339_v2 = vmov 0.0   ;;  %vm1340_vm0 = vmmov 0   ;;  %vm47_vm1 = vcmask 261120   ;;  %v1341_v25 = vmov 0   ;;  %s1343_s26 = smov 32   ;;  %s1623_s1 = inlined_call_operand.vmem [shape: f32[32,128], index: 1, kind: input, shape index: {}]   ;;  %s1624_s2 = inlined_call_operand.vmem [shape: f32[32,128], index: 2, kind: input, shape index: {}]   ;;  %s1625_s0 = inlined_call_operand.vmem [shape: f32[64,32], index: 0, kind: input, shape index: {}]   ;;  %s1626_s4 = inlined_call_operand.vmem [shape: s32[8,1], index: 4, kind: input, shape index: {}]   ;;  %s1627_s3 = inlined_call_operand.vmem [shape: f32[1,128], index: 3, kind: input, shape index: {}]   ;;  %s1628_s5 = inlined_call_operand.vmem [shape: f32[8,32], index: 5, kind: output, shape index: {}]  }
   0x1   :  { %v39_v0 = vld [vmem:[%s1623_s1 + $0x18] sm:$0xff]  ;;  %v38_v1 = vld [vmem:[%s1623_s1 + $0x10] sm:$0xff]  ;;  %1165 = vmatprep.subr.mxu1 %v1339_v2  ;;  %1173 = vmatprep.mubr.msk.f32.mxu1 %vm1340_vm0, %v1339_v2  ;;  %v37_v4 = vld [vmem:[%s1623_s1 + $0x8] sm:$0xff] }
   0x2   :  { %v1385_v3 = vld [vmem:[%s1624_s2 + $0x18] sm:$0xff]  ;;  %1145 = vmatprep.subr.mxu0 %v39_v0  ;;  %v1396_v5 = vld [vmem:[%s1624_s2 + $0x10] sm:$0xff]  ;;  %v20_v6 = vld [vmem:[%s1625_s0] sm:$0xff]  ;;  %1259 = vset.pattern.permute.xlu1 %v1341_v25 }
   0x3   :  { %1166 = vmatpush3.msra.mxu1 %v1385_v3  ;;  %1146 = vmatpush3.msra.mxu0 %v39_v0  ;;  %v21_v7 = vld [vmem:[%s1625_s0 + $0x8] sm:$0xff]  ;;  %v22_v8 = vld [vmem:[%s1625_s0 + $0x10] sm:$0xff]  ;;  %v23_v9 = vld [vmem:[%s1625_s0 + $0x18] sm:$0xff]  ;;  %1261 = vtanh.f32 %v20_v6 }
   0x4   :  { %1167 = vmatprep.subr.mxu1 %v1339_v2  ;;  %1147 = vmatprep.subr.mxu0 %v38_v1  ;;  %v36_v10 = vld [vmem:[%s1623_s1] sm:$0xff]  ;;  %1263 = vtanh.f32 %v21_v7  ;;  %v1422_v12 = vld [vmem:[%s1624_s2 + $0x8] sm:$0xff]  ;;  %v26_v15 = vld [vmem:[%s1625_s0 + $0x30] sm:$0xff] }
   0x5   :  { %1168 = vmatpush3.msra.mxu1 %v1396_v5  ;;  %1148 = vmatpush3.msra.mxu0 %v38_v1  ;;  %v24_v11 = vld [vmem:[%s1625_s0 + $0x20] sm:$0xff]  ;;  %1265 = vtanh.f32 %v22_v8  ;;  %v25_v14 = vld [vmem:[%s1625_s0 + $0x28] sm:$0xff]  ;;  %v27_v16 = vld [vmem:[%s1625_s0 + $0x38] sm:$0xff] }
   0x6   :  { %1169 = vmatprep.subr.mxu1 %v1339_v2  ;;  %1149 = vmatprep.subr.mxu0 %v37_v4  ;;  %v1428_v13 = vld [vmem:[%s1624_s2] sm:$0xff]  ;;  %1267 = vtanh.f32 %v23_v9 }
   0x7   :  { %1170 = vmatpush3.msra.mxu1 %v1422_v12  ;;  %1150 = vmatpush3.msra.mxu0 %v37_v4  ;;  %1269 = vtanh.f32 %v24_v11  ;;  %v1476_v26 = vld [vmem:[%s1626_s4] sm:$0xff]  ;;  %s1342_s4 = smov 64  }
   0x8   :  { %1171 = vmatprep.subr.mxu1 %v1339_v2  ;;  %1151 = vmatprep.subr.mxu0 %v36_v10  ;;  %1271 = vtanh.f32 %v25_v14  ;;  %vm289_vm2 = vcmp.gt.s32.totalorder %v1476_v26, 0  ;;  %v1484_v31 = vld [vmem:[%s1627_s3] ss:$0 sm:$0xff]  ;;  %vm399_vm4 = vcmp.gt.s32.totalorder %v1476_v26, 1  ;;  %vm509_vm6 = vcmp.gt.s32.totalorder %v1476_v26, 2  ;;  %s1344_s3 = smov 96  }
   0x9   :  { %1172 = vmatpush3.msra.mxu1 %v1428_v13  ;;  %1152 = vmatpush3.msra.mxu0 %v36_v10  ;;  %1273 = vtanh.f32 %v26_v15  ;;  %v290_v27 = vsel %vm289_vm2, 1, %v1341_v25  ;;  %v400_v56 = vsel %vm399_vm4, 1, %v1341_v25  ;;  %vm619_vm8 = vcmp.gt.s32.totalorder %v1476_v26, 3 }
   0xa   :  { %1174 = vmatmul.mubr.f32.vlgmr.msra.gmra.mxu1 %v1339_v2  ;;  %1176 = vmatprep.subr.mxu1 %v1339_v2  ;;  %1275 = vtanh.f32 %v27_v16  ;;  %vm729_vm10 = vcmp.gt.s32.totalorder %v1476_v26, 4  ;;  %vm839_vm12 = vcmp.gt.s32.totalorder %v1476_v26, 5  ;;  %vm949_vm14 = vcmp.gt.s32.totalorder %v1476_v26, 6 }
   0xb   :  { %1184 = vmatprep.mubr.msk.f32.mxu1 %vm1340_vm0, %v1339_v2  ;;  %1177 = vmatpush3.msra.mxu1 %v1385_v3 }
   0xc   :  { %1187 = vmatprep.subr.mxu0 %v1339_v2  ;;  %1178 = vmatprep.subr.mxu1 %v1339_v2 }
   0xd   :  { %1179 = vmatpush3.msra.mxu1 %v1396_v5  ;;  %1260 = vset.pattern.permute.xlu0 %v1341_v25 }
   0xe   :  { %1180 = vmatprep.subr.mxu1 %v1339_v2  ;;  %292 = vperm.xlu1 %1259, %v290_v27   ;;  %v510_v27 = vsel %vm509_vm6, 1, %v1341_v25 }
   0xf   :  { %1181 = vmatpush3.msra.mxu1 %v1422_v12 }
  0x10   :  { %1182 = vmatprep.subr.mxu1 %v1339_v2  ;;  %v1262_v17 = vpop.eup %1261 }
  0x11   :  { %1183 = vmatpush3.msra.mxu1 %v1428_v13  ;;  %v1264_v18 = vpop.eup %1263  ;;  %1153 = vmatprep.mubr.msk.f32.mxu0 %vm47_vm1, %v1262_v17 }
  0x12   :  { %1198 = vmatprep.subr.mxu1 %v1339_v2  ;;  %v1266_v19 = vpop.eup %1265  ;;  %1154 = vmatmul.mubr.msk.f32.vlgmr.msra.gmra.mxu0 %vm47_vm1, %v1264_v18 }
  0x13   :  { %v1268_v20 = vpop.eup %1267  ;;  %1188 = vmatpush3.msra.mxu0 %v1385_v3  ;;  %1156 = vmatprep.mubr.msk.f32.mxu0 %vm47_vm1, %v1266_v19 }
  0x14   :  { %v1270_v21 = vpop.eup %1269  ;;  %1189 = vmatprep.subr.mxu0 %v1339_v2 }
  0x15   :  { %1190 = vmatpush3.msra.mxu0 %v1396_v5  ;;  %v1272_v22 = vpop.eup %1271 }
  0x16   :  { %1157 = vmatmul.mubr.msk.f32.gmra.mxu0 %vm47_vm1, %v1268_v20  ;;  %1191 = vmatprep.subr.mxu0 %v1339_v2  ;;  %v1274_v23 = vpop.eup %1273 }
  0x17   :  { %1159 = vmatprep.mubr.msk.f32.mxu0 %vm47_vm1, %v1270_v21  ;;  %1192 = vmatpush3.msra.mxu0 %v1422_v12  ;;  %v1276_v24 = vpop.eup %1275 }
  0x18   :  { %1193 = vmatprep.subr.mxu0 %v1339_v2 }
  0x19   :  { %1194 = vmatpush3.msra.mxu0 %v1428_v13 }
  0x1a   :  { %1160 = vmatmul.mubr.msk.f32.gmra.mxu0 %vm47_vm1, %v1272_v22  ;;  %1209 = vmatprep.subr.mxu0 %v1339_v2 }
  0x1b   :  { %1162 = vmatprep.mubr.msk.f32.mxu0 %vm47_vm1, %v1274_v23 }
  0x1e   :  { %1163 = vmatmul.mubr.msk.f32.gmra.mxu0 %vm47_vm1, %v1276_v24 }
  0x1f   :  { %1195 = vmatprep.mubr.msk.f32.mxu0 %vm1340_vm0, %v1339_v2 }
  0x89   :  { %v293_v46 = vpop.permute.xlu1 %292 }
  0x8a   :  { %vm294_vm3 = vcmp.eq.s32.totalorder %v293_v46, 1 }
  0xca   :  { %v260_v28 = vpop.f32.mrf.mxu1 }
  0xcc   :  { %v1175_v29 = vpop.f32.mrf.mxu1 }
  0xd2   :  { %v1155_v30 = vpop.f32.mrf.mxu0 }
  0xd3   :  { %v144_v51 = vadd.f32 %v1155_v30, %v1484_v31 }
  0xd4   :  { %v138_v32 = vpop.f32.mrf.mxu0 }
  0xd5   :  { %v139_v33 = vadd.f32 %v1484_v31, %v138_v32 }
  0xd6   :  { %v1158_v14 = vpop.f32.mrf.mxu0 }
  0xd7   :  { %v264_v34 = vadd.f32 %v260_v28, %v139_v33 }
  0xd8   :  { %v148_v15 = vpop.f32.mrf.mxu0 }
  0xd9   :  { %1277 = vtanh.f32 %v264_v34  ;;  %v1078_v36 = vmul.f32 -1.442695, %v264_v34  ;;  %v149_v20 = vadd.f32 %v1484_v31, %v148_v15 }
  0xda   :  { %v1523_v16 = vpop.f32.mrf.mxu0 }
  0xdb   :  { %1279 = vpow2.f32 %v1078_v36 }
  0xdc   :  { %v1525_v17 = vpop.f32.mrf.mxu0 }
  0xde   :  { %v1527_v18 = vpop.f32.mrf.mxu0 }
  0xe0   :  { %v1529_v19 = vpop.f32.mrf.mxu0 }
  0xe6   :  { %v1278_v35 = vpop.eup %1277 }
  0xe7   :  { %274 = vrot.lane.b32.xlu0 %v1278_v35, %s1342_s4 }
  0xe8   :  { %v1280_v37 = vpop.eup %1279 }
  0xe9   :  { %v268_v38 = vadd.f32 1.0, %v1280_v37 }
  0xeb   :  { %1281 = vrcp.f32 %v268_v38 }
  0xf8   :  { %v1282_v39 = vpop.eup %1281 }
  0xf9   :  { %v272_v42 = vmul.f32 0.0, %v1282_v39 }
 0x159   :  { %v275_v40 = vpop.permute.xlu0 %274 }
 0x15a   :  { %v277_v41 = vmul.f32 %v1282_v39, %v275_v40 }
 0x15c   :  { %279 = vrot.lane.b32.xlu0 %v277_v41, %s1343_s26 }
 0x1ce   :  { %v280_v43 = vpop.permute.xlu0 %279 }
 0x1cf   :  { %v282_v44 = vadd.f32 %v280_v43, %v272_v42 }
 0x1d1   :  { %1283 = vtanh.f32 %v282_v44  ;;  %v296_v63 = vsel %vm294_vm3, %v282_v44, 0.0 }
 0x1de   :  { %v1284_v45 = vpop.eup %1283 }
 0x1df   :  { %285 = vrot.lane.b32.xlu1 %v1284_v45, %s1342_s4  ;;  %v154_v45 = vadd.f32 %v1158_v14, %v1484_v31 }
 0x251   :  { %v286_v47 = vpop.permute.xlu1 %285 }
 0x252   :  { %v288_v48 = vmul.f32 %v1282_v39, %v286_v47 }
 0x254   :  { %v295_v49 = vsel %vm294_vm3, %v288_v48, 0.0 }
 0x255   :  { %300 = vrot.lane.b32.xlu0 %v295_v49, %s1343_s26 }
 0x2c7   :  { %v301_v50 = vpop.permute.xlu0 %300 }
 0x2c8   :  { %1185 = vmatmul.mubr.msk.f32.vlgmr.msra.gmra.mxu1 %vm47_vm1, %v301_v50  ;;  %v620_v50 = vsel %vm619_vm8, 1, %v1341_v25 }
 0x2c9   :  { %1199 = vmatpush3.msra.mxu1 %v1385_v3  ;;  %1206 = vmatprep.mubr.msk.f32.mxu1 %vm1340_vm0, %v1339_v2 }
 0x2ca   :  { %1200 = vmatprep.subr.mxu1 %v1339_v2 }
 0x2cb   :  { %1201 = vmatpush3.msra.mxu1 %v1396_v5 }
 0x2cc   :  { %1202 = vmatprep.subr.mxu1 %v1339_v2 }
 0x2cd   :  { %1203 = vmatpush3.msra.mxu1 %v1422_v12 }
 0x2ce   :  { %1204 = vmatprep.subr.mxu1 %v1339_v2 }
 0x2cf   :  { %1205 = vmatpush3.msra.mxu1 %v1428_v13 }
 0x2d0   :  { %1220 = vmatprep.subr.mxu1 %v1339_v2 }
 0x388   :  { %v370_v52 = vpop.f32.mrf.mxu1 }
 0x389   :  { %v374_v53 = vadd.f32 %v370_v52, %v144_v51 }
 0x38a   :  { %v1186_v54 = vpop.f32.mrf.mxu1 }
 0x38b   :  { %1285 = vtanh.f32 %v374_v53  ;;  %v1080_v57 = vmul.f32 -1.442695, %v374_v53 }
 0x38d   :  { %1287 = vpow2.f32 %v1080_v57 }
 0x398   :  { %v1286_v55 = vpop.eup %1285 }
 0x399   :  { %384 = vrot.lane.b32.xlu1 %v1286_v55, %s1342_s4 }
 0x39a   :  { %v1288_v58 = vpop.eup %1287 }
 0x39b   :  { %v378_v59 = vadd.f32 1.0, %v1288_v58 }
 0x39d   :  { %402 = vperm.xlu1 %1259, %v400_v56   ;;  %1289 = vrcp.f32 %v378_v59 }
 0x3aa   :  { %v1290_v60 = vpop.eup %1289 }
 0x3ab   :  { %v382_v0 = vmul.f32 %v1290_v60, %v296_v63 }
 0x40b   :  { %v385_v61 = vpop.permute.xlu1 %384 }
 0x40c   :  { %v387_v62 = vmul.f32 %v1290_v60, %v385_v61 }
 0x40e   :  { %389 = vrot.lane.b32.xlu0 %v387_v62, %s1343_s26 }
 0x418   :  { %v403_v7 = vpop.permute.xlu1 %402 }
 0x419   :  { %vm404_vm5 = vcmp.eq.s32.totalorder %v403_v7, 1 }
 0x480   :  { %v390_v1 = vpop.permute.xlu0 %389 }
 0x481   :  { %v392_v4 = vadd.f32 %v390_v1, %v382_v0 }
 0x483   :  { %1291 = vtanh.f32 %v392_v4  ;;  %v406_v35 = vsel %vm404_vm5, %v392_v4, %v296_v63 }
 0x490   :  { %v1292_v6 = vpop.eup %1291 }
 0x491   :  { %395 = vrot.lane.b32.xlu0 %v1292_v6, %s1342_s4  ;;  %v159_v6 = vadd.f32 %v1484_v31, %v1525_v17 }
 0x503   :  { %v396_v8 = vpop.permute.xlu0 %395 }
 0x504   :  { %v398_v9 = vmul.f32 %v1290_v60, %v396_v8 }
 0x506   :  { %v405_v10 = vsel %vm404_vm5, %v398_v9, %v295_v49 }
 0x507   :  { %410 = vrot.lane.b32.xlu1 %v405_v10, %s1343_s26 }
 0x579   :  { %v411_v11 = vpop.permute.xlu1 %410 }
 0x57a   :  { %1196 = vmatmul.mubr.msk.f32.vlgmr.msra.gmra.mxu0 %vm47_vm1, %v411_v11  ;;  %v730_v11 = vsel %vm729_vm10, 1, %v1341_v25 }
 0x57b   :  { %1210 = vmatpush3.msra.mxu0 %v1385_v3  ;;  %1217 = vmatprep.mubr.msk.f32.mxu0 %vm1340_vm0, %v1339_v2 }
 0x57c   :  { %1211 = vmatprep.subr.mxu0 %v1339_v2 }
 0x57d   :  { %1212 = vmatpush3.msra.mxu0 %v1396_v5 }
 0x57e   :  { %1213 = vmatprep.subr.mxu0 %v1339_v2 }
 0x57f   :  { %1214 = vmatpush3.msra.mxu0 %v1422_v12 }
 0x580   :  { %1215 = vmatprep.subr.mxu0 %v1339_v2 }
 0x581   :  { %1216 = vmatpush3.msra.mxu0 %v1428_v13 }
 0x582   :  { %1231 = vmatprep.subr.mxu0 %v1339_v2 }
 0x63a   :  { %v480_v21 = vpop.f32.mrf.mxu0 }
 0x63b   :  { %v484_v22 = vadd.f32 %v480_v21, %v149_v20 }
 0x63c   :  { %v1197_v23 = vpop.f32.mrf.mxu0 }
 0x63d   :  { %1293 = vtanh.f32 %v484_v22  ;;  %v1082_v28 = vmul.f32 -1.442695, %v484_v22 }
 0x63f   :  { %1295 = vpow2.f32 %v1082_v28 }
 0x64a   :  { %v1294_v24 = vpop.eup %1293 }
 0x64b   :  { %494 = vrot.lane.b32.xlu0 %v1294_v24, %s1342_s4 }
 0x64c   :  { %v1296_v29 = vpop.eup %1295 }
 0x64d   :  { %v488_v30 = vadd.f32 1.0, %v1296_v29 }
 0x64f   :  { %512 = vperm.xlu0 %1260, %v510_v27   ;;  %1297 = vrcp.f32 %v488_v30 }
 0x65c   :  { %v1298_v32 = vpop.eup %1297 }
 0x65d   :  { %v492_v36 = vmul.f32 %v1298_v32, %v406_v35 }
 0x6bd   :  { %v495_v33 = vpop.permute.xlu0 %494 }
 0x6be   :  { %v497_v34 = vmul.f32 %v1298_v32, %v495_v33 }
 0x6c0   :  { %499 = vrot.lane.b32.xlu1 %v497_v34, %s1343_s26 }
 0x6ca   :  { %v513_v40 = vpop.permute.xlu0 %512 }
 0x6cb   :  { %vm514_vm7 = vcmp.eq.s32.totalorder %v513_v40, 1 }
 0x732   :  { %v500_v37 = vpop.permute.xlu1 %499 }
 0x733   :  { %v502_v38 = vadd.f32 %v500_v37, %v492_v36  ;;  %v164_v36 = vadd.f32 %v1523_v16, %v1484_v31 }
 0x735   :  { %1299 = vtanh.f32 %v502_v38  ;;  %v516_v57 = vsel %vm514_vm7, %v502_v38, %v406_v35 }
 0x742   :  { %v1300_v39 = vpop.eup %1299 }
 0x743   :  { %505 = vrot.lane.b32.xlu1 %v1300_v39, %s1342_s4 }
 0x7b5   :  { %v506_v41 = vpop.permute.xlu1 %505 }
 0x7b6   :  { %v508_v42 = vmul.f32 %v1298_v32, %v506_v41 }
 0x7b8   :  { %v515_v43 = vsel %vm514_vm7, %v508_v42, %v405_v10 }
 0x7b9   :  { %520 = vrot.lane.b32.xlu1 %v515_v43, %s1343_s26 }
 0x82b   :  { %v521_v44 = vpop.permute.xlu1 %520 }
 0x82c   :  { %1207 = vmatmul.mubr.msk.f32.vlgmr.msra.gmra.mxu1 %vm47_vm1, %v521_v44 }
 0x82d   :  { %1221 = vmatpush3.msra.mxu1 %v1385_v3  ;;  %1228 = vmatprep.mubr.msk.f32.mxu1 %vm1340_vm0, %v1339_v2 }
 0x82e   :  { %1222 = vmatprep.subr.mxu1 %v1339_v2 }
 0x82f   :  { %1223 = vmatpush3.msra.mxu1 %v1396_v5 }
 0x830   :  { %1224 = vmatprep.subr.mxu1 %v1339_v2 }
 0x831   :  { %1225 = vmatpush3.msra.mxu1 %v1422_v12 }
 0x832   :  { %1226 = vmatprep.subr.mxu1 %v1339_v2 }
 0x833   :  { %1227 = vmatpush3.msra.mxu1 %v1428_v13 }
 0x834   :  { %1242 = vmatprep.subr.mxu1 %v1339_v2 }
 0x8ec   :  { %v590_v46 = vpop.f32.mrf.mxu1 }
 0x8ed   :  { %v594_v47 = vadd.f32 %v590_v46, %v154_v45 }
 0x8ee   :  { %v1208_v48 = vpop.f32.mrf.mxu1 }
 0x8ef   :  { %1301 = vtanh.f32 %v594_v47  ;;  %v1084_v51 = vmul.f32 -1.442695, %v594_v47 }
 0x8f1   :  { %1303 = vpow2.f32 %v1084_v51 }
 0x8fc   :  { %v1302_v49 = vpop.eup %1301 }
 0x8fd   :  { %604 = vrot.lane.b32.xlu0 %v1302_v49, %s1342_s4 }
 0x8fe   :  { %v1304_v52 = vpop.eup %1303 }
 0x8ff   :  { %v598_v53 = vadd.f32 1.0, %v1304_v52  ;;  %v169_v52 = vadd.f32 %v1484_v31, %v1529_v19 }
 0x901   :  { %622 = vperm.xlu0 %1260, %v620_v50   ;;  %1305 = vrcp.f32 %v598_v53 }
 0x90e   :  { %v1306_v54 = vpop.eup %1305 }
 0x90f   :  { %v602_v58 = vmul.f32 %v1306_v54, %v516_v57 }
 0x96f   :  { %v605_v55 = vpop.permute.xlu0 %604 }
 0x970   :  { %v607_v56 = vmul.f32 %v1306_v54, %v605_v55 }
 0x972   :  { %609 = vrot.lane.b32.xlu1 %v607_v56, %s1343_s26 }
 0x97c   :  { %v623_v62 = vpop.permute.xlu0 %622 }
 0x97d   :  { %vm624_vm9 = vcmp.eq.s32.totalorder %v623_v62, 1 }
 0x9e4   :  { %v610_v59 = vpop.permute.xlu1 %609 }
 0x9e5   :  { %v612_v60 = vadd.f32 %v610_v59, %v602_v58 }
 0x9e7   :  { %1307 = vtanh.f32 %v612_v60  ;;  %v626_v23 = vsel %vm624_vm9, %v612_v60, %v516_v57  ;;  %v950_v57 = vsel %vm949_vm14, 1, %v1341_v25 }
 0x9f4   :  { %v1308_v61 = vpop.eup %1307 }
 0x9f5   :  { %615 = vrot.lane.b32.xlu1 %v1308_v61, %s1342_s4 }
 0xa67   :  { %v616_v63 = vpop.permute.xlu1 %615 }
 0xa68   :  { %v618_v0 = vmul.f32 %v1306_v54, %v616_v63 }
 0xa6a   :  { %v625_v1 = vsel %vm624_vm9, %v618_v0, %v515_v43 }
 0xa6b   :  { %630 = vrot.lane.b32.xlu0 %v625_v1, %s1343_s26 }
 0xadd   :  { %v631_v4 = vpop.permute.xlu0 %630 }
 0xade   :  { %1218 = vmatmul.mubr.msk.f32.vlgmr.msra.gmra.mxu0 %vm47_vm1, %v631_v4 }
 0xadf   :  { %1232 = vmatpush3.msra.mxu0 %v1385_v3  ;;  %1239 = vmatprep.mubr.msk.f32.mxu0 %vm1340_vm0, %v1339_v2 }
 0xae0   :  { %1233 = vmatprep.subr.mxu0 %v1339_v2 }
 0xae1   :  { %1234 = vmatpush3.msra.mxu0 %v1396_v5 }
 0xae2   :  { %1235 = vmatprep.subr.mxu0 %v1339_v2 }
 0xae3   :  { %1236 = vmatpush3.msra.mxu0 %v1422_v12 }
 0xae4   :  { %1237 = vmatprep.subr.mxu0 %v1339_v2 }
 0xae5   :  { %1238 = vmatpush3.msra.mxu0 %v1428_v13 }
 0xb9e   :  { %v700_v7 = vpop.f32.mrf.mxu0 }
 0xb9f   :  { %v704_v8 = vadd.f32 %v700_v7, %v159_v6 }
 0xba0   :  { %v1219_v9 = vpop.f32.mrf.mxu0 }
 0xba1   :  { %1309 = vtanh.f32 %v704_v8  ;;  %v1086_v14 = vmul.f32 -1.442695, %v704_v8 }
 0xba3   :  { %1311 = vpow2.f32 %v1086_v14 }
 0xbae   :  { %v1310_v10 = vpop.eup %1309 }
 0xbaf   :  { %714 = vrot.lane.b32.xlu1 %v1310_v10, %s1342_s4 }
 0xbb0   :  { %v1312_v15 = vpop.eup %1311 }
 0xbb1   :  { %v708_v20 = vadd.f32 1.0, %v1312_v15  ;;  %v174_v15 = vadd.f32 %v1527_v18, %v1484_v31 }
 0xbb3   :  { %732 = vperm.xlu1 %1259, %v730_v11   ;;  %1313 = vrcp.f32 %v708_v20 }
 0xbc0   :  { %v1314_v21 = vpop.eup %1313 }
 0xbc1   :  { %v712_v24 = vmul.f32 %v1314_v21, %v626_v23 }
 0xc21   :  { %v715_v22 = vpop.permute.xlu1 %714 }
 0xc22   :  { %v717_v17 = vmul.f32 %v1314_v21, %v715_v22 }
 0xc24   :  { %719 = vrot.lane.b32.xlu0 %v717_v17, %s1343_s26 }
 0xc2e   :  { %v733_v30 = vpop.permute.xlu1 %732 }
 0xc2f   :  { %vm734_vm11 = vcmp.eq.s32.totalorder %v733_v30, 1 }
 0xc96   :  { %v720_v27 = vpop.permute.xlu0 %719 }
 0xc97   :  { %v722_v28 = vadd.f32 %v720_v27, %v712_v24 }
 0xc99   :  { %1315 = vtanh.f32 %v722_v28  ;;  %v736_v42 = vsel %vm734_vm11, %v722_v28, %v626_v23 }
 0xca6   :  { %v1316_v29 = vpop.eup %1315 }
 0xca7   :  { %725 = vrot.lane.b32.xlu0 %v1316_v29, %s1342_s4 }
 0xd19   :  { %v726_v32 = vpop.permute.xlu0 %725 }
 0xd1a   :  { %v728_v33 = vmul.f32 %v1314_v21, %v726_v32 }
 0xd1c   :  { %v735_v34 = vsel %vm734_vm11, %v728_v33, %v625_v1 }
 0xd1d   :  { %740 = vrot.lane.b32.xlu1 %v735_v34, %s1343_s26 }
 0xd8f   :  { %v741_v35 = vpop.permute.xlu1 %740 }
 0xd90   :  { %1229 = vmatmul.mubr.msk.f32.vlgmr.msra.gmra.mxu1 %vm47_vm1, %v741_v35 }
 0xd91   :  { %1243 = vmatpush3.msra.mxu1 %v1385_v3  ;;  %1250 = vmatprep.mubr.msk.f32.mxu1 %vm1340_vm0, %v1339_v2  ;;  %vm1053_vm0 = vcmp.gt.s32.totalorder %v1476_v26, 7 }
 0xd92   :  { %1244 = vmatprep.subr.mxu1 %v1339_v2  ;;  %v1054_v11 = vsel %vm1053_vm0, 1, %v1341_v25 }
 0xd93   :  { %1245 = vmatpush3.msra.mxu1 %v1396_v5  ;;  %v840_v5 = vsel %vm839_vm12, 1, %v1341_v25 }
 0xd94   :  { %1246 = vmatprep.subr.mxu1 %v1339_v2 }
 0xd95   :  { %1247 = vmatpush3.msra.mxu1 %v1422_v12 }
 0xd96   :  { %1248 = vmatprep.subr.mxu1 %v1339_v2 }
 0xd97   :  { %1249 = vmatpush3.msra.mxu1 %v1428_v13 }
 0xe50   :  { %v810_v37 = vpop.f32.mrf.mxu1 }
 0xe51   :  { %v814_v3 = vadd.f32 %v810_v37, %v164_v36 }
 0xe52   :  { %v1230_v38 = vpop.f32.mrf.mxu1 }
 0xe53   :  { %1317 = vtanh.f32 %v814_v3  ;;  %v1088_v12 = vmul.f32 -1.442695, %v814_v3 }
 0xe55   :  { %1319 = vpow2.f32 %v1088_v12 }
 0xe60   :  { %v1318_v39 = vpop.eup %1317 }
 0xe61   :  { %824 = vrot.lane.b32.xlu0 %v1318_v39, %s1342_s4 }
 0xe62   :  { %v1320_v2 = vpop.eup %1319 }
 0xe63   :  { %v818_v40 = vadd.f32 1.0, %v1320_v2 }
 0xe65   :  { %842 = vperm.xlu0 %1260, %v840_v5   ;;  %1321 = vrcp.f32 %v818_v40 }
 0xe72   :  { %v1322_v13 = vpop.eup %1321 }
 0xe73   :  { %v822_v43 = vmul.f32 %v1322_v13, %v736_v42 }
 0xed3   :  { %v825_v41 = vpop.permute.xlu0 %824 }
 0xed4   :  { %v827_v16 = vmul.f32 %v1322_v13, %v825_v41 }
 0xed6   :  { %829 = vrot.lane.b32.xlu1 %v827_v16, %s1343_s26 }
 0xee0   :  { %v843_v47 = vpop.permute.xlu0 %842 }
 0xee1   :  { %vm844_vm13 = vcmp.eq.s32.totalorder %v843_v47, 1 }
 0xf48   :  { %v830_v44 = vpop.permute.xlu1 %829 }
 0xf49   :  { %v832_v45 = vadd.f32 %v830_v44, %v822_v43 }
 0xf4b   :  { %1323 = vtanh.f32 %v832_v45  ;;  %v846_v63 = vsel %vm844_vm13, %v832_v45, %v736_v42 }
 0xf58   :  { %v1324_v46 = vpop.eup %1323 }
 0xf59   :  { %835 = vrot.lane.b32.xlu1 %v1324_v46, %s1342_s4 }
 0xfcb   :  { %v836_v48 = vpop.permute.xlu1 %835 }
 0xfcc   :  { %v838_v49 = vmul.f32 %v1322_v13, %v836_v48 }
 0xfce   :  { %v845_v50 = vsel %vm844_vm13, %v838_v49, %v735_v34 }
 0xfcf   :  { %850 = vrot.lane.b32.xlu0 %v845_v50, %s1343_s26 }
0x1041   :  { %v851_v51 = vpop.permute.xlu0 %850 }
0x1042   :  { %1240 = vmatmul.mubr.msk.f32.vlgmr.msra.gmra.mxu0 %vm47_vm1, %v851_v51 }
0x1102   :  { %v920_v53 = vpop.f32.mrf.mxu0 }
0x1103   :  { %v924_v54 = vadd.f32 %v920_v53, %v169_v52 }
0x1104   :  { %v1241_v55 = vpop.f32.mrf.mxu0 }
0x1105   :  { %1325 = vtanh.f32 %v924_v54  ;;  %v1090_v58 = vmul.f32 -1.442695, %v924_v54 }
0x1107   :  { %1327 = vpow2.f32 %v1090_v58 }
0x1112   :  { %v1326_v56 = vpop.eup %1325 }
0x1113   :  { %934 = vrot.lane.b32.xlu1 %v1326_v56, %s1342_s4 }
0x1114   :  { %v1328_v59 = vpop.eup %1327 }
0x1115   :  { %v928_v60 = vadd.f32 1.0, %v1328_v59 }
0x1117   :  { %952 = vperm.xlu1 %1259, %v950_v57   ;;  %1329 = vrcp.f32 %v928_v60 }
0x1124   :  { %v1330_v61 = vpop.eup %1329 }
0x1125   :  { %v932_v0 = vmul.f32 %v1330_v61, %v846_v63 }
0x1185   :  { %v935_v62 = vpop.permute.xlu1 %934 }
0x1186   :  { %v937_v19 = vmul.f32 %v1330_v61, %v935_v62 }
0x1188   :  { %939 = vrot.lane.b32.xlu0 %v937_v19, %s1343_s26 }
0x1192   :  { %v953_v7 = vpop.permute.xlu1 %952 }
0x1193   :  { %vm954_vm15 = vcmp.eq.s32.totalorder %v953_v7, 1 }
0x11fa   :  { %v940_v1 = vpop.permute.xlu0 %939 }
0x11fb   :  { %v942_v4 = vadd.f32 %v940_v1, %v932_v0 }
0x11fd   :  { %1331 = vtanh.f32 %v942_v4  ;;  %v956_v29 = vsel %vm954_vm15, %v942_v4, %v846_v63 }
0x120a   :  { %v1332_v6 = vpop.eup %1331 }
0x120b   :  { %945 = vrot.lane.b32.xlu0 %v1332_v6, %s1342_s4 }
0x127d   :  { %v946_v8 = vpop.permute.xlu0 %945 }
0x127e   :  { %v948_v9 = vmul.f32 %v1330_v61, %v946_v8 }
0x1280   :  { %v955_v10 = vsel %vm954_vm15, %v948_v9, %v845_v50 }
0x1281   :  { %960 = vrot.lane.b32.xlu1 %v955_v10, %s1343_s26 }
0x1285   :  { %1056 = vperm.xlu1 %1259, %v1054_v11  }
0x12f3   :  { %v961_v14 = vpop.permute.xlu1 %960 }
0x12f4   :  { %1251 = vmatmul.mubr.msk.f32.vlgmr.msra.gmra.mxu1 %vm47_vm1, %v961_v14 }
0x1300   :  { %v1057_v31 = vpop.permute.xlu1 %1056 }
0x1301   :  { %vm1058_vm2 = vcmp.eq.s32.totalorder %v1057_v31, 1 }
0x13b4   :  { %v1030_v20 = vpop.f32.mrf.mxu1 }
0x13b5   :  { %v1034_v21 = vadd.f32 %v1030_v20, %v174_v15 }
0x13b6   :  { %v1252_v22 = vpop.f32.mrf.mxu1 }
0x13b7   :  { %1333 = vtanh.f32 %v1034_v21  ;;  %v1092_v26 = vmul.f32 -1.442695, %v1034_v21 }
0x13b9   :  { %1335 = vpow2.f32 %v1092_v26 }
0x13c4   :  { %v1334_v17 = vpop.eup %1333 }
0x13c5   :  { %1044 = vrot.lane.b32.xlu0 %v1334_v17, %s1342_s4 }
0x13c6   :  { %v1336_v23 = vpop.eup %1335 }
0x13c7   :  { %v1038_v24 = vadd.f32 1.0, %v1336_v23 }
0x13c9   :  { %1337 = vrcp.f32 %v1038_v24 }
0x13d6   :  { %v1338_v25 = vpop.eup %1337 }
0x13d7   :  { %v1042_v18 = vmul.f32 %v1338_v25, %v956_v29 }
0x1437   :  { %v1045_v27 = vpop.permute.xlu0 %1044 }
0x1438   :  { %v1047_v28 = vmul.f32 %v1338_v25, %v1045_v27 }
0x143a   :  { %1049 = vrot.lane.b32.xlu0 %v1047_v28, %s1343_s26 }
0x14ac   :  { %v1050_v30 = vpop.permute.xlu0 %1049 }
0x14ad   :  { %v1052_v32 = vadd.f32 %v1050_v30, %v1042_v18 }
0x14af   :  { %v1059_v33 = vsel %vm1058_vm2, %v1052_v32, %v956_v29 }
0x14b0   :  { %1061 = vrot.lane.b32.xlu1 %v1059_v33, %s1344_s3 }
0x1522   :  { %v1062_v34 = vpop.permute.xlu1 %1061 }
0x1523   :  { %1064 = vst.msk [vmem:[%s1628_s5] sm:$0xff] %vm47_vm1, %v1062_v34 }

</bundles_post_ra>
